<compile_context>
chip_gen: v7x
topology: tpu7x:2x2x1
jax: 0.10.0
libtpu: 0.0.40
codegen_flags: <defaults>
</compile_context>

<pallas_src>
import functools

import jax
import jax.numpy as jnp
from jax.experimental import pallas as pl
from jax.experimental.pallas import tpu as pltpu

LANE = 128
# 4096 x 128 f32 = 2 MiB per block: near the measured HBM-roofline sweet spot,
# and 3 inputs x 2 buffers x 2 MiB = 12 MiB fits every generation's VMEM.
MAX_TILE_R = 4096


def _mape_kernel(*refs, rows, tile_r, has_mask, need_row_mask):
    if has_mask:
        f_ref, t_ref, m_ref, out_ref = refs
    else:
        f_ref, t_ref, out_ref = refs

    # Upcast inside the kernel (VPU work hidden under DMA); the wrapper feeds
    # the original dtype so HBM traffic stays minimal for bf16 inputs.
    f = f_ref[...].astype(jnp.float32)
    t = t_ref[...].astype(jnp.float32)

    # divide_no_nan semantics from the reference: a/b, then NaN -> 0 and
    # +inf -> 0 (the reference only zeroes +inf, not -inf; we match it).
    if has_mask:
        w = m_ref[...].astype(jnp.float32) / t
    else:
        w = 1.0 / t
    w = jnp.where(w != w, 0.0, w)          # NaN -> 0
    w = jnp.where(w == jnp.inf, 0.0, w)    # +inf -> 0
    contrib = jnp.abs((f - t) * w)

    # Only the out-of-bounds rows of the final partial grid block can hold
    # garbage (the lane axis is always fully valid).  Guard them with a single
    # row-only iota + compare; compiled out entirely when tiles divide evenly.
    # Masking AFTER contrib so NaN/inf from garbage cannot leak into the sum.
    if need_row_mask:
        i = pl.program_id(0)
        valid_rows = jnp.minimum(rows - i * tile_r, tile_r)
        row = jax.lax.broadcasted_iota(jnp.int32, contrib.shape, 0)
        contrib = jnp.where(row < valid_rows, contrib, 0.0)

    # One partial sum per grid step -> independent output blocks -> the grid
    # axis is truly parallel (megacore-shardable on v7x).
    out_ref[0, 0] = jnp.sum(contrib)


def _divide_no_nan(a, b):
    w = a / b
    w = jnp.where(w != w, 0.0, w)
    w = jnp.where(w == jnp.inf, 0.0, w)
    return w


def mape_loss(forecast, target, mask=None):
    has_mask = mask is not None

    n = forecast.size                     # number of real elements for the mean
    n_main = (n // LANE) * LANE           # 128-aligned prefix handled by the kernel
    rows = n_main // LANE

    f_flat = forecast.reshape(-1)
    t_flat = target.reshape(-1)
    m_flat = mask.reshape(-1) if has_mask else None

    total = jnp.float32(0.0)

    if rows > 0:
        # Prefix slice + reshape: a no-op when n % 128 == 0 (the common case).
        f2 = f_flat[:n_main].reshape(rows, LANE)
        t2 = t_flat[:n_main].reshape(rows, LANE)
        inputs = (f2, t2)
        if has_mask:
            inputs = inputs + (m_flat[:n_main].reshape(rows, LANE),)

        # Tile policy: sublane-aligned (multiple of 8) unless the slab is tiny,
        # capped at MAX_TILE_R, and split into >= 2 tiles whenever possible so
        # the parallel grid axis keeps both v7x TensorCores busy.
        if rows <= 8:
            tile_r = rows                          # full-extent block
        else:
            half = -(-rows // 2)
            tile_r = min(MAX_TILE_R, -(-half // 8) * 8)
        num_tiles = -(-rows // tile_r)
        need_row_mask = (rows % tile_r) != 0

        tile_spec = pl.BlockSpec((tile_r, LANE), lambda i: (i, 0))
        in_specs = [tile_spec] * len(inputs)

        in_bytes = sum(int(x.size) * x.dtype.itemsize for x in inputs)
        cost = pl.CostEstimate(
            flops=12 * n_main,
            transcendentals=0,
            bytes_accessed=in_bytes + num_tiles * 4,
        )

        partials = pl.pallas_call(
            functools.partial(
                _mape_kernel,
                rows=rows,
                tile_r=tile_r,
                has_mask=has_mask,
                need_row_mask=need_row_mask,
            ),
            out_shape=jax.ShapeDtypeStruct((num_tiles, 1), jnp.float32),
            grid=(num_tiles,),
            in_specs=in_specs,
            out_specs=pl.BlockSpec((1, 1), lambda i: (i, 0),
                                   memory_space=pltpu.SMEM),
            compiler_params=pltpu.CompilerParams(
                dimension_semantics=("parallel",),
                vmem_limit_bytes=48 * 1024 * 1024),
            cost_estimate=cost,
        )(*inputs)

        total = total + jnp.sum(partials)

    # <=127-element unaligned tail: trivial plain-JAX sum (no padded copies).
    if n_main < n:
        f_t = f_flat[n_main:].astype(jnp.float32)
        t_t = t_flat[n_main:].astype(jnp.float32)
        if has_mask:
            m_t = m_flat[n_main:].astype(jnp.float32)
        else:
            m_t = jnp.ones_like(t_t)
        total = total + jnp.sum(jnp.abs((f_t - t_t) * _divide_no_nan(m_t, t_t)))

    return (total / jnp.float32(n)).astype(jnp.float32)


def _reference_mape(forecast, target, mask=None):
    # Pure-JAX reference mirroring the PyTorch module exactly.
    if mask is None:
        mask = jnp.ones_like(target)
    w = _divide_no_nan(mask, target)
    return jnp.mean(jnp.abs((forecast - target) * w))


if __name__ == "__main__":
    key = jax.random.PRNGKey(0)
    k1, k2, k3 = jax.random.split(key, 3)

    batch, time, features = 2, 8, 32
    forecast = jax.random.normal(k1, (batch, time, features), jnp.float32)
    target = jax.random.normal(k2, (batch, time, features), jnp.float32)
    # Sprinkle in some exact zeros in target to exercise divide_no_nan.
    target = target * (jax.random.uniform(k3, target.shape) > 0.1)
    mask = jnp.ones_like(target)

    loss_fn = jax.jit(mape_loss)

    # With an explicit mask.
    out = jax.block_until_ready(loss_fn(forecast, target, mask))
    ref = _reference_mape(forecast, target, mask)
    assert jnp.allclose(out, ref, rtol=1e-5, atol=1e-6), (out, ref)

    # mask=None specialization (only 2 HBM streams).
    out_nm = jax.block_until_ready(loss_fn(forecast, target, None))
    ref_nm = _reference_mape(forecast, target, None)
    assert jnp.allclose(out_nm, ref_nm, rtol=1e-5, atol=1e-6), (out_nm, ref_nm)

    print("KERNEL_OK")
</pallas_src>

<mosaic_0001>
module attributes {stable_mosaic.version = 11 : i64} {
  func.func @_mape_kernel(%arg0: i32, %arg1: memref<4x128xf32, #tpu.memory_space<vmem>>, %arg2: memref<4x128xf32, #tpu.memory_space<vmem>>, %arg3: memref<4x128xf32, #tpu.memory_space<vmem>>, %arg4: memref<1x1xf32, #tpu.memory_space<smem>>) attributes {dimension_semantics = [#tpu.dimension_semantics<parallel>], iteration_bounds = array<i64: 1>, scalar_prefetch = 0 : i64, scratch_operands = 0 : i64, tpu.core_type = #tpu.core_type<tc>, window_params = [{transform_indices = @transform_0, window_bounds = array<i64: 4, 128>}, {transform_indices = @transform_1, window_bounds = array<i64: 4, 128>}, {transform_indices = @transform_2, window_bounds = array<i64: 4, 128>}, {transform_indices = @transform_3, window_bounds = array<i64: 1, 1>}]} {
    %c0 = arith.constant 0 : index
    %c0_0 = arith.constant 0 : index
    %0 = vector.load %arg1[%c0, %c0_0] : memref<4x128xf32, #tpu.memory_space<vmem>>, vector<4x128xf32>
    %c0_1 = arith.constant 0 : index
    %c0_2 = arith.constant 0 : index
    %1 = vector.load %arg2[%c0_1, %c0_2] : memref<4x128xf32, #tpu.memory_space<vmem>>, vector<4x128xf32>
    %c0_3 = arith.constant 0 : index
    %c0_4 = arith.constant 0 : index
    %2 = vector.load %arg3[%c0_3, %c0_4] : memref<4x128xf32, #tpu.memory_space<vmem>>, vector<4x128xf32>
    %3 = arith.divf %2, %1 : vector<4x128xf32>
    %4 = arith.cmpf one, %3, %3 : vector<4x128xf32>
    %cst = arith.constant 0.000000e+00 : f32
    %5 = vector.broadcast %cst : f32 to vector<4x128xf32>
    %6 = arith.select %4, %5, %3 : vector<4x128xi1>, vector<4x128xf32>
    %cst_5 = arith.constant 0x7F800000 : f32
    %7 = vector.broadcast %cst_5 : f32 to vector<4x128xf32>
    %8 = arith.cmpf oeq, %6, %7 : vector<4x128xf32>
    %cst_6 = arith.constant 0.000000e+00 : f32
    %9 = vector.broadcast %cst_6 : f32 to vector<4x128xf32>
    %10 = arith.select %8, %9, %6 : vector<4x128xi1>, vector<4x128xf32>
    %11 = arith.subf %0, %1 : vector<4x128xf32>
    %12 = arith.mulf %11, %10 : vector<4x128xf32>
    %13 = math.absf %12 : vector<4x128xf32>
    %14 = vector.shape_cast %13 : vector<4x128xf32> to vector<1x4x128xf32>
    %cst_7 = arith.constant dense<0.000000e+00> : vector<1xf32>
    %15 = vector.multi_reduction <add>, %14, %cst_7 [1, 2] : vector<1x4x128xf32> to vector<1xf32>
    %16 = vector.shape_cast %15 : vector<1xf32> to vector<1x1x1xf32>
    %17 = vector.extract %16[0, 0, 0] : f32 from vector<1x1x1xf32>
    %c0_8 = arith.constant 0 : index
    %c0_9 = arith.constant 0 : index
    %18 = memref.load %arg4[%c0_8, %c0_9] : memref<1x1xf32, #tpu.memory_space<smem>>
    memref.store %17, %arg4[%c0_8, %c0_9] : memref<1x1xf32, #tpu.memory_space<smem>>
    return
  }
  func.func @transform_0(%arg0: i32) -> (i32, i32) {
    %c0_i32 = arith.constant 0 : i32
    %c0_i32_0 = arith.constant 0 : i32
    return %arg0, %c0_i32 : i32, i32
  }
  func.func @transform_1(%arg0: i32) -> (i32, i32) {
    %c0_i32 = arith.constant 0 : i32
    %c0_i32_0 = arith.constant 0 : i32
    return %arg0, %c0_i32 : i32, i32
  }
  func.func @transform_2(%arg0: i32) -> (i32, i32) {
    %c0_i32 = arith.constant 0 : i32
    %c0_i32_0 = arith.constant 0 : i32
    return %arg0, %c0_i32 : i32, i32
  }
  func.func @transform_3(%arg0: i32) -> (i32, i32) {
    %c0_i32 = arith.constant 0 : i32
    %c0_i32_0 = arith.constant 0 : i32
    return %arg0, %c0_i32 : i32, i32
  }
}

</mosaic_0001>

<bundles_post_ra>
// kernel: mape_loss.1
= control target key start
LH: loop header
LB: loop body
LE: loop exit
PB: predicated region body
PF: predicated region fallthrough
CT: control target
= control target key end

     0   :  { %s112_s0 = inlined_call_operand.vmem [shape: f32[4,128], index: 0, kind: input, shape index: {}]   ;;  %s113_s1 = inlined_call_operand.vmem [shape: f32[4,128], index: 1, kind: input, shape index: {}]   ;;  %s114_s2 = inlined_call_operand.vmem [shape: f32[4,128], index: 2, kind: input, shape index: {}]   ;;  %s115_s3 = inlined_call_operand.hbm [shape: f32[1,1], index: 3, kind: output, shape index: {}]  }
   0x1   :  { %v16_v0 = vld [vmem:[%s113_s1] sm:$0xf] }
   0x2   :  { %56 = vrcp.f32 %v16_v0 }
   0x3   :  { %8 = vsyncpa [#allocation3], 0  ;;  %v17_v1 = vld [vmem:[%s114_s2] sm:$0xf]  ;;  %vm27_vm2 = vcmask 1043456   ;;  %s58_s18 = scalar_lea.hbm %s115_s3, 16 }
   0x4   :  { %v15_v3 = vld [vmem:[%s112_s0] sm:$0xf]  ;;  %p59_p0 = scmp.ne.s32.totalorder %s115_s3, %s58_s18  ;;  %p62_p1 = scmp.lt.u32.totalorder %s58_s18, %s115_s3 }
   0x5   :  { %v24_v5 = vsub.f32 %v15_v3, %v16_v0 }
   0x6   :  { %p64_p2 = pnand %p62_p1, %p59_p0 }
   0xc   :  { %v57_v2 = vpop.eup %56 }
   0xd   :  { %v19_v4 = vmul.f32 %v57_v2, %v17_v1 }
   0xf   :  { %vm20_vm0 = vcmp.ne.f32.partialorder %v19_v4, %v19_v4 }
  0x10   :  { %v21_v6 = vsel %vm20_vm0, 0.0, %v19_v4 }
  0x11   :  { %vm22_vm1 = vcmp.eq.f32.partialorder %v21_v6, inf }
  0x12   :  { %v23_v7 = vsel %vm22_vm1, 0.0, %v21_v6 }
  0x13   :  { %v25_v8 = vmul.f32 %v24_v5, %v23_v7 }
  0x15   :  { %v26_v9 = vand.u32 2147483647, %v25_v8 }
  0x17   :  { %v28_v10 = vsel %vm27_vm2, %v26_v9, 0.0 }
  0x18   :  { %29 = vadd.xlane.f32.xlu0 %v28_v10 }
  0xa5   :  { %v30_v11 = vpop.xlane.xlu0 %29 }
  0xa6   :  { %v31_v12 = vrot.slane %v30_v11, 4 }
  0xa8   :  { %v32_v13 = vadd.f32 %v31_v12, %v30_v11 }
  0xaa   :  { %v33_v14 = vrot.slane %v32_v13, 2 }
  0xac   :  { %v34_v15 = vadd.f32 %v33_v14, %v32_v13 }
  0xae   :  { %v35_v16 = vrot.slane %v34_v15, 1 }
  0xb0   :  { %v36_v17 = vadd.f32 %v35_v16, %v34_v15 }
  0xb2   :  { %53 = vpush %v36_v17 }
  0xe3   :  { %s54_s0 = spop %53 }
  0xe4   :  { %39 = sst [smem:[#allocation2]] %s54_s0 }
  0xe5   :  { %67 = shalt.err (!%p64_p2)
}
  0xe6   :  { %s70_s23 = smov [#allocation2]  }
  0xe7   :  { %47 = dma.smem_to_hbm %s70_s23, 16, %s115_s3, [#allocation3]  }
  0xe8   :  { %68 = dma.done.wait [#allocation3], 16  }
  0xe9   :  { %69 = vsyncadd [#allocation3], 4294967280 }
  0xea   :  { %51 = sfence }
  0xeb   :  { %52 = vsyncpa [#allocation3], 1 }

</bundles_post_ra>
